<compile_context>
chip_gen: v6e
topology: v6e:2x2x1
jax: 0.10.0
libtpu: 0.0.40
codegen_flags: <defaults>
</compile_context>

<pallas_src>
import jax
import jax.numpy as jnp
from jax.experimental import pallas as pl
from jax.experimental.pallas import tpu as pltpu


def _mlp_kernel(x_ref, w1_ref, b1_ref, w2_ref, b2_ref,
                w3_ref, b3_ref, w4_ref, b4_ref, o_ref):
    """Transposed fused MLP: activations are [features, batch_tile]."""
    xt = x_ref[...]                       # [2, TB] f32
    w1 = w1_ref[...]                      # [128, 2] f32 (PyTorch [out, in])

    # fc1 (K=2): degenerate matmul -> two VPU broadcast-FMAs (outer products).
    h1 = (w1[:, 0:1] * xt[0:1, :]
          + w1[:, 1:2] * xt[1:2, :]
          + b1_ref[...])                  # [128, TB] f32
    h1 = jnp.maximum(h1, 0.0)

    # fc2 / fc3: MXU matmuls with bf16 operands, f32 accumulation.
    h2 = jnp.dot(w2_ref[...], h1.astype(jnp.bfloat16),
                 preferred_element_type=jnp.float32) + b2_ref[...]
    h2 = jnp.maximum(h2, 0.0)             # [64, TB] f32

    h3 = jnp.dot(w3_ref[...], h2.astype(jnp.bfloat16),
                 preferred_element_type=jnp.float32) + b3_ref[...]
    h3 = jnp.maximum(h3, 0.0)             # [8, TB] f32

    # fc4 (N=1): VPU multiply + 8-deep sublane reduction; scalar bias in SMEM.
    out = jnp.sum(h3 * w4_ref[...], axis=0, keepdims=True) + b4_ref[0]
    o_ref[...] = out.astype(o_ref.dtype)  # [1, TB] -> lane-dense store


def _per_gen_batch_tile_cap():
    """Clamp the batch tile per TPU generation (v5e has the smallest scoped VMEM)."""
    try:
        kind = jax.devices()[0].device_kind.lower()
    except Exception:
        return 4096
    if "v5 lite" in kind or "v5e" in kind:
        return 4096
    return 8192


def backbone_forward(x, params, *, batch_tile=4096):
    """x: [B, 2] float32 (PyTorch nn.Linear input layout). Returns [B, 1] f32."""
    B = x.shape[0]
    w1, b1 = params["fc1"]   # [128, 2], [128]
    w2, b2 = params["fc2"]   # [64, 128], [64]
    w3, b3 = params["fc3"]   # [8, 64],  [8]
    w4, b4 = params["fc4"]   # [1, 8],   [1]

    lane = 128
    batch_tile = min(batch_tile, _per_gen_batch_tile_cap())
    # Size the tile so the grid has >= 2 steps whenever B allows it, keeping
    # both v7x TensorCores busy under dimension_semantics=("parallel",).
    half_pad = ((-(-B // 2) + lane - 1) // lane) * lane
    tb = max(lane, min(batch_tile, half_pad))
    b_pad = ((B + tb - 1) // tb) * tb
    grid = (b_pad // tb,)

    # Batch lives on the lane axis inside the kernel -> pad + transpose once
    # (single fused XLA copy before the kernel).
    # TODO(synk): store x transposed upstream (or do the 2-row transpose
    # in-kernel on the XLU) to remove this extra HBM pass at very large B.
    xt = jnp.transpose(jnp.pad(x, ((0, b_pad - B), (0, 0))))   # [2, b_pad]

    operands = (
        xt,
        w1, b1.reshape(128, 1),
        w2.astype(jnp.bfloat16), b2.reshape(64, 1),
        w3.astype(jnp.bfloat16), b3.reshape(8, 1),
        w4.reshape(8, 1),          # [1, 8] -> [8, 1] so it broadcasts over [8, TB]
        b4.reshape(1),             # scalar bias -> SMEM
    )

    const = lambda i: (0, 0)       # weights/biases: same block every step (VMEM-resident)
    in_specs = [
        pl.BlockSpec((2, tb), lambda i: (0, i)),            # x tile
        pl.BlockSpec((128, 2), const),                      # w1 (f32)
        pl.BlockSpec((128, 1), const),                      # b1
        pl.BlockSpec((64, 128), const),                     # w2 (bf16)
        pl.BlockSpec((64, 1), const),                       # b2
        pl.BlockSpec((8, 64), const),                       # w3 (bf16)
        pl.BlockSpec((8, 1), const),                        # b3
        pl.BlockSpec((8, 1), const),                        # w4 (transposed)
        pl.BlockSpec(memory_space=pltpu.MemorySpace.SMEM),  # b4 scalar
    ]
    out_specs = pl.BlockSpec((1, tb), lambda i: (0, i))

    flops = 2 * b_pad * (2 * 128 + 128 * 64 + 64 * 8 + 8)
    param_bytes = (4 * (128 * 2 + 128 + 64 + 8 + 8 + 1)
                   + 2 * (64 * 128 + 8 * 64))
    cost = pl.CostEstimate(flops=flops, transcendentals=0,
                           bytes_accessed=4 * b_pad * 3 + param_bytes)

    out_t = pl.pallas_call(
        _mlp_kernel,
        out_shape=jax.ShapeDtypeStruct((1, b_pad), jnp.float32),
        grid=grid,
        in_specs=in_specs,
        out_specs=out_specs,
        compiler_params=pltpu.CompilerParams(
            dimension_semantics=("parallel",),
            vmem_limit_bytes=32 * 1024 * 1024),
        cost_estimate=cost,
    )(*operands)

    return out_t[0, :B].reshape(B, 1)


def init_params(key):
    """PyTorch nn.Linear-shaped params: weight (out, in), bias (out,)."""
    dims = [(2, 128), (128, 64), (64, 8), (8, 1)]   # (in, out) per layer
    names = ["fc1", "fc2", "fc3", "fc4"]
    params = {}
    for name, (din, dout) in zip(names, dims):
        key, kw, kb = jax.random.split(key, 3)
        bound = 1.0 / (din ** 0.5)                  # nn.Linear default uniform bound
        w = jax.random.uniform(kw, (dout, din), jnp.float32, -bound, bound)
        b = jax.random.uniform(kb, (dout,), jnp.float32, -bound, bound)
        params[name] = (w, b)
    return params


def reference_forward(x, params):
    """Pure-JAX f32 reference (standard [B, features] layout)."""
    h = x
    for name in ("fc1", "fc2", "fc3"):
        w, b = params[name]
        h = jnp.maximum(h @ w.T + b, 0.0)
    w, b = params["fc4"]
    return h @ w.T + b


if __name__ == "__main__":
    key = jax.random.PRNGKey(0)
    key, kx, kx2 = jax.random.split(key, 3)
    params = init_params(key)

    # Tolerance accounts for the bf16 MXU-operand cast on fc2/fc3 (f32 accum).
    tol = dict(atol=2e-2, rtol=2e-2)

    # Small-batch check (tile clamps to 128, single grid step).
    B = 8
    x = jax.random.normal(kx, (B, 2), jnp.float32)
    out = jax.block_until_ready(backbone_forward(x, params))
    ref = reference_forward(x, params)
    assert out.shape == (B, 1), out.shape
    assert jnp.allclose(out, ref, **tol), float(jnp.max(jnp.abs(out - ref)))

    # Moderate batch exercising the multi-step grid + weight-resident pipeline.
    B2 = 1000
    x2 = jax.random.normal(kx2, (B2, 2), jnp.float32)
    out2 = jax.block_until_ready(backbone_forward(x2, params))
    ref2 = reference_forward(x2, params)
    assert out2.shape == (B2, 1), out2.shape
    assert jnp.allclose(out2, ref2, **tol), float(jnp.max(jnp.abs(out2 - ref2)))

    print("KERNEL_OK")
</pallas_src>

<mosaic_0001>
module attributes {stable_mosaic.version = 11 : i64} {
  func.func @_mlp_kernel(%arg0: i32, %arg1: memref<2x128xf32, #tpu.memory_space<vmem>>, %arg2: memref<128x2xf32, #tpu.memory_space<vmem>>, %arg3: memref<128x1xf32, #tpu.memory_space<vmem>>, %arg4: memref<64x128xbf16, #tpu.memory_space<vmem>>, %arg5: memref<64x1xf32, #tpu.memory_space<vmem>>, %arg6: memref<8x64xbf16, #tpu.memory_space<vmem>>, %arg7: memref<8x1xf32, #tpu.memory_space<vmem>>, %arg8: memref<8x1xf32, #tpu.memory_space<vmem>>, %arg9: memref<1xf32, #tpu.memory_space<smem>>, %arg10: memref<1x128xf32, #tpu.memory_space<vmem>>) attributes {dimension_semantics = [#tpu.dimension_semantics<parallel>], iteration_bounds = array<i64: 1>, scalar_prefetch = 0 : i64, scratch_operands = 0 : i64, tpu.core_type = #tpu.core_type<tc>, window_params = [{transform_indices = @transform_0, window_bounds = array<i64: 2, 128>}, {pipeline_mode = #tpu.pipeline_mode<synchronous>, transform_indices = @transform_1, window_bounds = array<i64: 128, 2>}, {pipeline_mode = #tpu.pipeline_mode<synchronous>, transform_indices = @transform_2, window_bounds = array<i64: 128, 1>}, {pipeline_mode = #tpu.pipeline_mode<synchronous>, transform_indices = @transform_3, window_bounds = array<i64: 64, 128>}, {pipeline_mode = #tpu.pipeline_mode<synchronous>, transform_indices = @transform_4, window_bounds = array<i64: 64, 1>}, {pipeline_mode = #tpu.pipeline_mode<synchronous>, transform_indices = @transform_5, window_bounds = array<i64: 8, 64>}, {pipeline_mode = #tpu.pipeline_mode<synchronous>, transform_indices = @transform_6, window_bounds = array<i64: 8, 1>}, {pipeline_mode = #tpu.pipeline_mode<synchronous>, transform_indices = @transform_7, window_bounds = array<i64: 8, 1>}, {transform_indices = @transform_8, window_bounds = array<i64: 1>}, {transform_indices = @transform_9, window_bounds = array<i64: 1, 128>}]} {
    %c0 = arith.constant 0 : index
    %c0_0 = arith.constant 0 : index
    %0 = vector.load %arg1[%c0, %c0_0] : memref<2x128xf32, #tpu.memory_space<vmem>>, vector<2x128xf32>
    %c0_1 = arith.constant 0 : index
    %c0_2 = arith.constant 0 : index
    %1 = vector.load %arg2[%c0_1, %c0_2] : memref<128x2xf32, #tpu.memory_space<vmem>>, vector<128x2xf32>
    %2 = vector.extract_strided_slice %1 {offsets = [0, 0], sizes = [128, 1], strides = [1, 1]} : vector<128x2xf32> to vector<128x1xf32>
    %3 = vector.extract_strided_slice %0 {offsets = [0, 0], sizes = [1, 128], strides = [1, 1]} : vector<2x128xf32> to vector<1x128xf32>
    %4 = vector.broadcast %2 : vector<128x1xf32> to vector<128x128xf32>
    %5 = vector.broadcast %3 : vector<1x128xf32> to vector<128x128xf32>
    %6 = arith.mulf %4, %5 : vector<128x128xf32>
    %7 = vector.extract_strided_slice %1 {offsets = [0, 1], sizes = [128, 1], strides = [1, 1]} : vector<128x2xf32> to vector<128x1xf32>
    %8 = vector.extract_strided_slice %0 {offsets = [1, 0], sizes = [1, 128], strides = [1, 1]} : vector<2x128xf32> to vector<1x128xf32>
    %9 = vector.broadcast %7 : vector<128x1xf32> to vector<128x128xf32>
    %10 = vector.broadcast %8 : vector<1x128xf32> to vector<128x128xf32>
    %11 = arith.mulf %9, %10 : vector<128x128xf32>
    %12 = arith.addf %6, %11 : vector<128x128xf32>
    %c0_3 = arith.constant 0 : index
    %c0_4 = arith.constant 0 : index
    %13 = vector.load %arg3[%c0_3, %c0_4] : memref<128x1xf32, #tpu.memory_space<vmem>>, vector<128x1xf32>
    %14 = vector.broadcast %13 : vector<128x1xf32> to vector<128x128xf32>
    %15 = arith.addf %12, %14 : vector<128x128xf32>
    %cst = arith.constant 0.000000e+00 : f32
    %16 = vector.broadcast %cst : f32 to vector<128x128xf32>
    %17 = arith.maximumf %15, %16 : vector<128x128xf32>
    %c0_5 = arith.constant 0 : index
    %c0_6 = arith.constant 0 : index
    %18 = vector.load %arg4[%c0_5, %c0_6] : memref<64x128xbf16, #tpu.memory_space<vmem>>, vector<64x128xbf16>
    %19 = arith.truncf %17 : vector<128x128xf32> to vector<128x128xbf16>
    %cst_7 = arith.constant dense<0.000000e+00> : vector<64x128xf32>
    %20 = tpu.matmul %18, %19, %cst_7 {dimension_numbers = #tpu.dot_dimension_numbers<[1], [0], [0], [1], [0, 0, 1, 1], [], []>} : vector<64x128xbf16>, vector<128x128xbf16>, vector<64x128xf32> -> vector<64x128xf32>
    %c0_8 = arith.constant 0 : index
    %c0_9 = arith.constant 0 : index
    %21 = vector.load %arg5[%c0_8, %c0_9] : memref<64x1xf32, #tpu.memory_space<vmem>>, vector<64x1xf32>
    %22 = vector.broadcast %21 : vector<64x1xf32> to vector<64x128xf32>
    %23 = arith.addf %20, %22 : vector<64x128xf32>
    %cst_10 = arith.constant 0.000000e+00 : f32
    %24 = vector.broadcast %cst_10 : f32 to vector<64x128xf32>
    %25 = arith.maximumf %23, %24 : vector<64x128xf32>
    %c0_11 = arith.constant 0 : index
    %c0_12 = arith.constant 0 : index
    %26 = vector.load %arg6[%c0_11, %c0_12] : memref<8x64xbf16, #tpu.memory_space<vmem>>, vector<8x64xbf16>
    %27 = arith.truncf %25 : vector<64x128xf32> to vector<64x128xbf16>
    %cst_13 = arith.constant dense<0.000000e+00> : vector<8x128xf32>
    %28 = tpu.matmul %26, %27, %cst_13 {dimension_numbers = #tpu.dot_dimension_numbers<[1], [0], [0], [1], [0, 0, 1, 1], [], []>} : vector<8x64xbf16>, vector<64x128xbf16>, vector<8x128xf32> -> vector<8x128xf32>
    %c0_14 = arith.constant 0 : index
    %c0_15 = arith.constant 0 : index
    %29 = vector.load %arg7[%c0_14, %c0_15] : memref<8x1xf32, #tpu.memory_space<vmem>>, vector<8x1xf32>
    %30 = vector.broadcast %29 : vector<8x1xf32> to vector<8x128xf32>
    %31 = arith.addf %28, %30 : vector<8x128xf32>
    %cst_16 = arith.constant 0.000000e+00 : f32
    %32 = vector.broadcast %cst_16 : f32 to vector<8x128xf32>
    %33 = arith.maximumf %31, %32 : vector<8x128xf32>
    %c0_17 = arith.constant 0 : index
    %c0_18 = arith.constant 0 : index
    %34 = vector.load %arg8[%c0_17, %c0_18] : memref<8x1xf32, #tpu.memory_space<vmem>>, vector<8x1xf32>
    %35 = vector.broadcast %34 : vector<8x1xf32> to vector<8x128xf32>
    %36 = arith.mulf %33, %35 : vector<8x128xf32>
    %cst_19 = arith.constant dense<0.000000e+00> : vector<128xf32>
    %37 = vector.multi_reduction <add>, %36, %cst_19 [0] : vector<8x128xf32> to vector<128xf32>
    %38 = vector.shape_cast %37 : vector<128xf32> to vector<1x128xf32>
    %c0_20 = arith.constant 0 : index
    %39 = memref.load %arg9[%c0_20] : memref<1xf32, #tpu.memory_space<smem>>
    %40 = vector.broadcast %39 : f32 to vector<1x128xf32>
    %41 = arith.addf %38, %40 : vector<1x128xf32>
    %c0_21 = arith.constant 0 : index
    %c0_22 = arith.constant 0 : index
    %42 = vector.load %arg10[%c0_21, %c0_22] : memref<1x128xf32, #tpu.memory_space<vmem>>, vector<1x128xf32>
    tpu.vector_store %arg10[%c0_21, %c0_22], %41 {strides = array<i32>} : memref<1x128xf32, #tpu.memory_space<vmem>>, vector<1x128xf32>,
    return
  }
  func.func @transform_0(%arg0: i32) -> (i32, i32) {
    %c0_i32 = arith.constant 0 : i32
    %c0_i32_0 = arith.constant 0 : i32
    return %c0_i32, %arg0 : i32, i32
  }
  func.func @transform_1(%arg0: i32) -> (i32, i32) {
    %c0_i32 = arith.constant 0 : i32
    %c0_i32_0 = arith.constant 0 : i32
    %c0_i32_1 = arith.constant 0 : i32
    return %c0_i32, %c0_i32_0 : i32, i32
  }
  func.func @transform_2(%arg0: i32) -> (i32, i32) {
    %c0_i32 = arith.constant 0 : i32
    %c0_i32_0 = arith.constant 0 : i32
    %c0_i32_1 = arith.constant 0 : i32
    return %c0_i32, %c0_i32_0 : i32, i32
  }
  func.func @transform_3(%arg0: i32) -> (i32, i32) {
    %c0_i32 = arith.constant 0 : i32
    %c0_i32_0 = arith.constant 0 : i32
    %c0_i32_1 = arith.constant 0 : i32
    return %c0_i32, %c0_i32_0 : i32, i32
  }
  func.func @transform_4(%arg0: i32) -> (i32, i32) {
    %c0_i32 = arith.constant 0 : i32
    %c0_i32_0 = arith.constant 0 : i32
    %c0_i32_1 = arith.constant 0 : i32
    return %c0_i32, %c0_i32_0 : i32, i32
  }
  func.func @transform_5(%arg0: i32) -> (i32, i32) {
    %c0_i32 = arith.constant 0 : i32
    %c0_i32_0 = arith.constant 0 : i32
    %c0_i32_1 = arith.constant 0 : i32
    return %c0_i32, %c0_i32_0 : i32, i32
  }
  func.func @transform_6(%arg0: i32) -> (i32, i32) {
    %c0_i32 = arith.constant 0 : i32
    %c0_i32_0 = arith.constant 0 : i32
    %c0_i32_1 = arith.constant 0 : i32
    return %c0_i32, %c0_i32_0 : i32, i32
  }
  func.func @transform_7(%arg0: i32) -> (i32, i32) {
    %c0_i32 = arith.constant 0 : i32
    %c0_i32_0 = arith.constant 0 : i32
    %c0_i32_1 = arith.constant 0 : i32
    return %c0_i32, %c0_i32_0 : i32, i32
  }
  func.func @transform_8(%arg0: i32) -> i32 {
    %c0_i32 = arith.constant 0 : i32
    %c0_i32_0 = arith.constant 0 : i32
    return %c0_i32 : i32
  }
  func.func @transform_9(%arg0: i32) -> (i32, i32) {
    %c0_i32 = arith.constant 0 : i32
    %c0_i32_0 = arith.constant 0 : i32
    return %c0_i32, %arg0 : i32, i32
  }
}

</mosaic_0001>

<bundles_post_ra>
// kernel: tpu_custom_call.1
= control target key start
LH: loop header
LB: loop body
LE: loop exit
PB: predicated region body
PF: predicated region fallthrough
CT: control target
= control target key end

     0   :  { %v735_v2 = vmov 1   ;;  %v736_v7 = vmov 0   ;;  %s1020_s0 = inlined_call_operand.vmem [shape: f32[2,128], index: 0, kind: input, shape index: {}]   ;;  %s1021_s1 = inlined_call_operand.vmem [shape: f32[128,2], index: 1, kind: input, shape index: {}]   ;;  %s1022_s2 = inlined_call_operand.vmem [shape: f32[128,1], index: 2, kind: input, shape index: {}]   ;;  %s1023_s3 = inlined_call_operand.vmem [shape: bf16[64,128], index: 3, kind: input, shape index: {}]   ;;  %s1024_s4 = inlined_call_operand.vmem [shape: f32[64,1], index: 4, kind: input, shape index: {}]   ;;  %s1025_s5 = inlined_call_operand.vmem [shape: bf16[8,64], index: 5, kind: input, shape index: {}]   ;;  %s1026_s6 = inlined_call_operand.vmem [shape: f32[8,1], index: 6, kind: input, shape index: {}]   ;;  %s1027_s7 = inlined_call_operand.vmem [shape: f32[8,1], index: 7, kind: input, shape index: {}]   ;;  %s1028_s8 = inlined_call_operand.<no memory space> [shape: f32[1], index: 8, kind: input, shape index: {}]   ;;  %s1029_s9 = inlined_call_operand.hbm [shape: f32[1,128], index: 9, kind: output, shape index: {}]  }
   0x1   :  { %v50_v0 = vld [vmem:[%s1021_s1 + $0x70] sm:$0xff]  ;;  %v48_v1 = vld [vmem:[%s1021_s1 + $0x60] sm:$0xff]  ;;  %693 = vset.pattern.permute.xlu0 %v735_v2  ;;  %691 = vset.pattern.permute.xlu1 %v735_v2  ;;  %v51_v3 = vld [vmem:[%s1021_s1 + $0x78] sm:$0xff] }
   0x2   :  { %209 = vperm.xlu1 %691, %v50_v0   ;;  %201 = vperm.xlu0 %693, %v48_v1   ;;  %v46_v4 = vld [vmem:[%s1021_s1 + $0x50] sm:$0xff]  ;;  %v44_v5 = vld [vmem:[%s1021_s1 + $0x40] sm:$0xff]  ;;  %v49_v6 = vld [vmem:[%s1021_s1 + $0x68] sm:$0xff] }
   0x3   :  { %v42_v8 = vld [vmem:[%s1021_s1 + $0x30] sm:$0xff]  ;;  %v40_v9 = vld [vmem:[%s1021_s1 + $0x20] sm:$0xff] }
   0x6   :  { %213 = vperm.xlu1 %691, %v51_v3   ;;  %193 = vperm.xlu0 %693, %v46_v4  }
   0xa   :  { %692 = vset.pattern.permute.xlu1 %v736_v7  ;;  %185 = vperm.xlu0 %693, %v44_v5  }
   0xb   :  { %119 = vperm.xlu1 %692, %v49_v6  }
   0xe   :  { %177 = vperm.xlu0 %693, %v42_v8  }
   0xf   :  { %694 = vset.pattern.permute.xlu1 %v735_v2 }
  0x10   :  { %15 = vsyncpa [#allocation4], 0  ;;  %205 = vperm.xlu1 %694, %v49_v6   ;;  %v266_v10 = vld [vmem:[%s1022_s2 + $0x70] sm:$0xff]  ;;  %v831_v12 = vld [vmem:[%s1021_s1] sm:$0xff]  ;;  %v132_v51 = vlaneseq  ;;  %vm738_vm0 = vmmov 0   ;;  %vm552_vm1 = vcmask 523264  }
  0x11   :  { %v824_v11 = vld [vmem:[%s1021_s1 + $0x10] sm:$0xff]  ;;  %v47_v13 = vld [vmem:[%s1021_s1 + $0x58] sm:$0xff]  ;;  %v264_v14 = vld [vmem:[%s1022_s2 + $0x60] sm:$0xff] }
  0x12   :  { %169 = vperm.xlu0 %693, %v40_v9   ;;  %v267_v15 = vld [vmem:[%s1022_s2 + $0x78] sm:$0xff]  ;;  %v45_v16 = vld [vmem:[%s1021_s1 + $0x48] sm:$0xff]  ;;  %v262_v20 = vld [vmem:[%s1022_s2 + $0x50] sm:$0xff]  ;;  %v133_v55 = vshrl.u32 %v132_v51, 7 }
  0x13   :  { %v265_v17 = vld [vmem:[%s1022_s2 + $0x68] sm:$0xff]  ;;  %v263_v18 = vld [vmem:[%s1022_s2 + $0x58] sm:$0xff]  ;;  %v402_v25 = vld [vmem:[%s1024_s4 + $0x30] sm:$0xff] }
  0x14   :  { %695 = vset.pattern.permute.xlu1 %v736_v7  ;;  %v261_v19 = vld [vmem:[%s1022_s2 + $0x48] sm:$0xff]  ;;  %v259_v21 = vld [vmem:[%s1022_s2 + $0x38] sm:$0xff]  ;;  %v260_v26 = vld [vmem:[%s1022_s2 + $0x40] sm:$0xff]  ;;  %v218_v59 = vsub.s32 1, %v133_v55  ;;  %v134_v60 = vsub.s32 0, %v133_v55 }
  0x15   :  { %340 = vperm.xlu1 %695, %v266_v10   ;;  %v257_v22 = vld [vmem:[%s1022_s2 + $0x28] sm:$0xff]  ;;  %v43_v23 = vld [vmem:[%s1021_s1 + $0x38] sm:$0xff]  ;;  %v400_v27 = vld [vmem:[%s1024_s4 + $0x20] sm:$0xff] }
  0x16   :  { %161 = vperm.xlu0 %693, %v824_v11   ;;  %v255_v24 = vld [vmem:[%s1022_s2 + $0x18] sm:$0xff]  ;;  %v398_v28 = vld [vmem:[%s1024_s4 + $0x10] sm:$0xff]  ;;  %v41_v29 = vld [vmem:[%s1021_s1 + $0x28] sm:$0xff] }
  0x17   :  { %v396_v30 = vld [vmem:[%s1024_s4] sm:$0xff]  ;;  %v258_v32 = vld [vmem:[%s1022_s2 + $0x30] sm:$0xff]  ;;  %v39_v33 = vld [vmem:[%s1021_s1 + $0x18] sm:$0xff] }
  0x18   :  { %v546_v31 = vld [vmem:[%s1026_s6] sm:$0xff]  ;;  %v37_v35 = vld [vmem:[%s1021_s1 + $0x8] sm:$0xff]  ;;  %v254_v38 = vld [vmem:[%s1022_s2 + $0x10] sm:$0xff] }
  0x19   :  { %104 = vperm.xlu1 %695, %v46_v4   ;;  %v256_v34 = vld [vmem:[%s1022_s2 + $0x20] sm:$0xff]  ;;  %v253_v44 = vld [vmem:[%s1022_s2 + $0x8] sm:$0xff]  ;;  %v403_v46 = vld [vmem:[%s1024_s4 + $0x38] sm:$0xff] }
  0x1a   :  { %153 = vperm.xlu0 %693, %v831_v12   ;;  %v252_v41 = vld [vmem:[%s1022_s2] sm:$0xff]  ;;  %v401_v50 = vld [vmem:[%s1024_s4 + $0x28] sm:$0xff]  ;;  %v399_v54 = vld [vmem:[%s1024_s4 + $0x18] sm:$0xff] }
  0x1b   :  { %v709_v48 = vld [vmem:[%s1023_s3] sm:$0xff]   ;;  %v397_v58 = vld [vmem:[%s1024_s4 + $0x8] sm:$0xff] }
  0x1c   :  { %666 = vmatprep.mubr.bf16.mxu0 %v709_v48  ;;  %v35_v61 = vld [vmem:[%s1020_s0] sm:$0x3] }
  0x1d   :  { %109 = vperm.xlu1 %695, %v47_v13  }
  0x1e   :  { %706 = vset.pattern.permute.xlu0 %v736_v7 }
  0x1f   :  { %124 = vperm.xlu0 %706, %v50_v0   ;;  %v597_v0 = vld [vmem:[%s1027_s7] sm:$0xff] }
  0x21   :  { %696 = vset.pattern.permute.xlu1 %v735_v2 }
  0x22   :  { %197 = vperm.xlu1 %696, %v47_v13  }
  0x23   :  { %129 = vperm.xlu0 %706, %v51_v3  }
  0x26   :  { %697 = vset.pattern.permute.xlu1 %v736_v7 }
  0x27   :  { %330 = vperm.xlu1 %697, %v264_v14   ;;  %114 = vperm.xlu0 %706, %v48_v1   ;;  %v960_v1 = vrot.slane %v35_v61, %v218_v59 }
  0x2b   :  { %94 = vperm.xlu1 %697, %v44_v5   ;;  %345 = vperm.xlu0 %706, %v267_v15  }
  0x2f   :  { %99 = vperm.xlu1 %697, %v45_v16   ;;  %335 = vperm.xlu0 %706, %v265_v17  }
  0x33   :  { %698 = vset.pattern.permute.xlu1 %v735_v2  ;;  %325 = vperm.xlu0 %706, %v263_v18  }
  0x34   :  { %189 = vperm.xlu1 %698, %v45_v16  }
  0x37   :  { %315 = vperm.xlu0 %706, %v261_v19  }
  0x38   :  { %699 = vset.pattern.permute.xlu1 %v736_v7 }
  0x39   :  { %320 = vperm.xlu1 %699, %v262_v20  }
  0x3b   :  { %305 = vperm.xlu0 %706, %v259_v21  }
  0x3d   :  { %84 = vperm.xlu1 %699, %v42_v8  }
  0x3f   :  { %295 = vperm.xlu0 %706, %v257_v22  }
  0x41   :  { %89 = vperm.xlu1 %699, %v43_v23  }
  0x43   :  { %285 = vperm.xlu0 %706, %v255_v24  }
  0x45   :  { %700 = vset.pattern.permute.xlu1 %v735_v2 }
  0x46   :  { %181 = vperm.xlu1 %700, %v43_v23  }
  0x47   :  { %436 = vperm.xlu0 %706, %v402_v25  }
  0x4a   :  { %701 = vset.pattern.permute.xlu1 %v736_v7 }
  0x4b   :  { %310 = vperm.xlu1 %701, %v260_v26   ;;  %426 = vperm.xlu0 %706, %v400_v27  }
  0x4f   :  { %74 = vperm.xlu1 %701, %v40_v9   ;;  %416 = vperm.xlu0 %706, %v398_v28  }
  0x53   :  { %79 = vperm.xlu1 %701, %v41_v29   ;;  %406 = vperm.xlu0 %706, %v396_v30  }
  0x57   :  { %702 = vset.pattern.permute.xlu1 %v735_v2  ;;  %549 = vperm.xlu0 %706, %v546_v31  }
  0x58   :  { %173 = vperm.xlu1 %702, %v41_v29  }
  0x5c   :  { %703 = vset.pattern.permute.xlu1 %v736_v7 }
  0x5d   :  { %300 = vperm.xlu1 %703, %v258_v32  }
  0x61   :  { %64 = vperm.xlu1 %703, %v824_v11  }
  0x65   :  { %69 = vperm.xlu1 %703, %v39_v33  }
  0x69   :  { %704 = vset.pattern.permute.xlu1 %v735_v2 }
  0x6a   :  { %165 = vperm.xlu1 %704, %v39_v33  }
  0x6e   :  { %705 = vset.pattern.permute.xlu1 %v736_v7 }
  0x6f   :  { %290 = vperm.xlu1 %705, %v256_v34  }
  0x73   :  { %54 = vperm.xlu1 %705, %v831_v12  }
  0x77   :  { %59 = vperm.xlu1 %705, %v37_v35  }
  0x7b   :  { %707 = vset.pattern.permute.xlu1 %v735_v2  ;;  %v962_v2 = vrot.slane %v35_v61, %v134_v60 }
  0x7c   :  { %157 = vperm.xlu1 %707, %v37_v35  }
  0x7d   :  { %v210_v36 = vpop.permute.xlu1 %209  ;;  %v202_v37 = vpop.permute.xlu0 %201 }
  0x7e   :  { %v234_v6 = vmul.f32 %v960_v1, %v210_v36 }
  0x80   :  { %708 = vset.pattern.permute.xlu1 %v736_v7  ;;  %v232_v7 = vmul.f32 %v960_v1, %v202_v37 }
  0x81   :  { %v214_v39 = vpop.permute.xlu1 %213  ;;  %280 = vperm.xlu1 %708, %v254_v38   ;;  %v921_v40 = vpop.permute.xlu0 %193 }
  0x82   :  { %v235_v12 = vmul.f32 %v960_v1, %v214_v39  ;;  %v230_v33 = vmul.f32 %v960_v1, %v921_v40 }
  0x85   :  { %270 = vperm.xlu1 %708, %v252_v41   ;;  %v926_v42 = vpop.permute.xlu0 %185 }
  0x86   :  { %v120_v43 = vpop.permute.xlu1 %119  ;;  %v228_v55 = vmul.f32 %v960_v1, %v926_v42 }
  0x87   :  { %v149_v20 = vmul.f32 %v962_v2, %v120_v43 }
  0x89   :  { %275 = vperm.xlu1 %708, %v253_v44   ;;  %v931_v45 = vpop.permute.xlu0 %177 }
  0x8b   :  { %v206_v47 = vpop.permute.xlu1 %205 }
  0x8c   :  { %v233_v14 = vmul.f32 %v960_v1, %v206_v47 }
  0x8d   :  { %441 = vperm.xlu1 %708, %v403_v46   ;;  %v939_v49 = vpop.permute.xlu0 %169 }
  0x8e   :  { %v249_v24 = vadd.f32 %v233_v14, %v149_v20 }
  0x90   :  { %v341_v52 = vpop.permute.xlu1 %340 }
  0x91   :  { %431 = vperm.xlu1 %708, %v401_v50   ;;  %v944_v53 = vpop.permute.xlu0 %161 }
  0x94   :  { %v105_v56 = vpop.permute.xlu1 %104 }
  0x95   :  { %421 = vperm.xlu1 %708, %v399_v54   ;;  %v949_v57 = vpop.permute.xlu0 %153  ;;  %v146_v34 = vmul.f32 %v962_v2, %v105_v56 }
  0x97   :  { %v246_v43 = vadd.f32 %v230_v33, %v146_v34 }
  0x98   :  { %v110_v62 = vpop.permute.xlu1 %109 }
  0x99   :  { %411 = vperm.xlu1 %708, %v397_v58   ;;  %v147_v35 = vmul.f32 %v962_v2, %v110_v62 }
  0x9a   :  { %v125_v63 = vpop.permute.xlu0 %124 }
  0x9b   :  { %v150_v3 = vmul.f32 %v962_v2, %v125_v63 }
  0x9d   :  { %v198_v4 = vpop.permute.xlu1 %197  ;;  %600 = vperm.xlu1 %708, %v597_v0   ;;  %v250_v8 = vadd.f32 %v234_v6, %v150_v3 }
  0x9e   :  { %v130_v5 = vpop.permute.xlu0 %129  ;;  %v231_v30 = vmul.f32 %v960_v1, %v198_v4 }
  0x9f   :  { %v151_v9 = vmul.f32 %v962_v2, %v130_v5  ;;  %v362_v17 = vadd.f32 %v341_v52, %v250_v8 }
  0xa0   :  { %v247_v39 = vadd.f32 %v231_v30, %v147_v35 }
  0xa1   :  { %v251_v16 = vadd.f32 %v235_v12, %v151_v9  ;;  %v378_v25 = vmax.f32 %v362_v17, 0.0  ;;  %v226_v9 = vmul.f32 %v960_v1, %v931_v45 }
  0xa2   :  { %v331_v10 = vpop.permute.xlu1 %330  ;;  %v115_v11 = vpop.permute.xlu0 %114 }
  0xa3   :  { %v148_v13 = vmul.f32 %v962_v2, %v115_v11 }
  0xa5   :  { %v248_v15 = vadd.f32 %v232_v7, %v148_v13 }
  0xa6   :  { %v95_v18 = vpop.permute.xlu1 %94  ;;  %v346_v19 = vpop.permute.xlu0 %345 }
  0xa7   :  { %v363_v21 = vadd.f32 %v346_v19, %v251_v16  ;;  %v360_v22 = vadd.f32 %v331_v10, %v248_v15  ;;  %v144_v56 = vmul.f32 %v962_v2, %v95_v18 }
  0xa9   :  { %v379_v23 = vmax.f32 %v363_v21, 0.0  ;;  %v376_v31 = vmax.f32 %v360_v22, 0.0  ;;  %v244_v62 = vadd.f32 %v228_v55, %v144_v56 }
  0xaa   :  { %v100_v26 = vpop.permute.xlu1 %99  ;;  %v336_v27 = vpop.permute.xlu0 %335 }
  0xab   :  { %v361_v28 = vadd.f32 %v336_v27, %v249_v24  ;;  %v395_v29 = vpack.c.bf16 %v379_v23, %v378_v25  ;;  %v145_v54 = vmul.f32 %v962_v2, %v100_v26  ;;  %v224_v27 = vmul.f32 %v960_v1, %v939_v49 }
  0xad   :  { %v377_v32 = vmax.f32 %v361_v28, 0.0  ;;  %650 = vmatprep.subr.bf16.mxu0 %v395_v29 }
  0xae   :  { %651 = vmatpush3.bf16.msra.mxu0 %v395_v29  ;;  %v326_v38 = vpop.permute.xlu0 %325 }
  0xaf   :  { %v394_v36 = vpack.c.bf16 %v377_v32, %v376_v31  ;;  %v190_v37 = vpop.permute.xlu1 %189  ;;  %v359_v41 = vadd.f32 %v326_v38, %v247_v39 }
  0xb0   :  { %v229_v52 = vmul.f32 %v960_v1, %v190_v37 }
  0xb1   :  { %652 = vmatprep.subr.bf16.mxu0 %v394_v36  ;;  %v375_v47 = vmax.f32 %v359_v41, 0.0 }
  0xb2   :  { %653 = vmatpush3.bf16.msra.mxu0 %v394_v36  ;;  %v245_v58 = vadd.f32 %v229_v52, %v145_v54  ;;  %v316_v60 = vpop.permute.xlu0 %315  ;;  %v220_v52 = vmul.f32 %v960_v1, %v949_v57  ;;  %v710_v57 = vld [vmem:[%s1023_s3 + $0x8] sm:$0xff]  }
  0xb4   :  { %v321_v44 = vpop.permute.xlu1 %320  ;;  %v357_v61 = vadd.f32 %v316_v60, %v245_v58 }
  0xb5   :  { %v358_v46 = vadd.f32 %v321_v44, %v246_v43  ;;  %v222_v44 = vmul.f32 %v960_v1, %v944_v53 }
  0xb6   :  { %v373_v3 = vmax.f32 %v357_v61, 0.0  ;;  %v306_v13 = vpop.permute.xlu0 %305 }
  0xb7   :  { %v374_v48 = vmax.f32 %v358_v46, 0.0 }
  0xb8   :  { %v85_v50 = vpop.permute.xlu1 %84 }
  0xb9   :  { %v393_v51 = vpack.c.bf16 %v375_v47, %v374_v48  ;;  %v142_v10 = vmul.f32 %v962_v2, %v85_v50 }
  0xba   :  { %v296_v28 = vpop.permute.xlu0 %295 }
  0xbb   :  { %654 = vmatprep.subr.bf16.mxu0 %v393_v51  ;;  %v242_v15 = vadd.f32 %v226_v9, %v142_v10 }
  0xbc   :  { %v90_v40 = vpop.permute.xlu1 %89  ;;  %655 = vmatpush3.bf16.msra.mxu0 %v393_v51 }
  0xbd   :  { %v143_v42 = vmul.f32 %v962_v2, %v90_v40 }
  0xbe   :  { %v286_v46 = vpop.permute.xlu0 %285 }
  0xc1   :  { %v182_v59 = vpop.permute.xlu1 %181 }
  0xc2   :  { %v227_v8 = vmul.f32 %v960_v1, %v182_v59  ;;  %v437_v9 = vpop.permute.xlu0 %436 }
  0xc4   :  { %v243_v11 = vadd.f32 %v227_v8, %v143_v42 }
  0xc6   :  { %v311_v63 = vpop.permute.xlu1 %310  ;;  %v355_v14 = vadd.f32 %v306_v13, %v243_v11 }
  0xc7   :  { %v356_v0 = vadd.f32 %v311_v63, %v244_v62 }
  0xc8   :  { %v371_v19 = vmax.f32 %v355_v14, 0.0  ;;  %v427_v14 = vpop.permute.xlu0 %426 }
  0xc9   :  { %v372_v4 = vmax.f32 %v356_v0, 0.0 }
  0xca   :  { %v75_v5 = vpop.permute.xlu1 %74 }
  0xcb   :  { %v392_v6 = vpack.c.bf16 %v373_v3, %v372_v4  ;;  %v140_v24 = vmul.f32 %v962_v2, %v75_v5 }
  0xcd   :  { %656 = vmatprep.subr.bf16.mxu0 %v392_v6  ;;  %v240_v30 = vadd.f32 %v224_v27, %v140_v24  ;;  %v417_v24 = vpop.permute.xlu0 %416 }
  0xce   :  { %v80_v7 = vpop.permute.xlu1 %79  ;;  %657 = vmatpush3.bf16.msra.mxu0 %v392_v6  ;;  %v737_v6 = vmov 0.0  }
  0xcf   :  { %v141_v45 = vmul.f32 %v962_v2, %v80_v7  ;;  %674 = vmatprep.subr.bf16.mxu1 %v737_v6  ;;  %682 = vmatprep.mubr.msk.bf16.mxu1 %vm738_vm0, %v737_v6 }
  0xd3   :  { %v174_v12 = vpop.permute.xlu1 %173 }
  0xd4   :  { %v225_v23 = vmul.f32 %v960_v1, %v174_v12 }
  0xd6   :  { %v241_v25 = vadd.f32 %v225_v23, %v141_v45 }
  0xd8   :  { %v301_v16 = vpop.permute.xlu1 %300  ;;  %v353_v29 = vadd.f32 %v296_v28, %v241_v25 }
  0xd9   :  { %v354_v17 = vadd.f32 %v301_v16, %v242_v15 }
  0xda   :  { %v369_v34 = vmax.f32 %v353_v29, 0.0 }
  0xdb   :  { %v370_v18 = vmax.f32 %v354_v17, 0.0 }
  0xdc   :  { %v65_v20 = vpop.permute.xlu1 %64 }
  0xdd   :  { %v391_v21 = vpack.c.bf16 %v371_v19, %v370_v18  ;;  %v138_v41 = vmul.f32 %v962_v2, %v65_v20 }
  0xdf   :  { %658 = vmatprep.subr.bf16.mxu0 %v391_v21  ;;  %v238_v48 = vadd.f32 %v222_v44, %v138_v41 }
  0xe0   :  { %v70_v22 = vpop.permute.xlu1 %69  ;;  %659 = vmatpush3.bf16.msra.mxu0 %v391_v21 }
  0xe1   :  { %v139_v39 = vmul.f32 %v962_v2, %v70_v22 }
  0xe5   :  { %v166_v26 = vpop.permute.xlu1 %165 }
  0xe6   :  { %v223_v38 = vmul.f32 %v960_v1, %v166_v26 }
  0xe8   :  { %v239_v43 = vadd.f32 %v223_v38, %v139_v39 }
  0xea   :  { %v291_v31 = vpop.permute.xlu1 %290  ;;  %v351_v47 = vadd.f32 %v286_v46, %v239_v43  ;;  %v541_v43 = vld [vmem:[%s1025_s5] sm:$0xf]  ;;  %s739_s5 = smov [#allocation3]  }
  0xeb   :  { %v352_v32 = vadd.f32 %v291_v31, %v240_v30  ;;  %s620_s15 = sshll.u32 %s739_s5, 4  ;;  %s621_s15 = int_to_ptr.vmem [resolvable:$true] %s620_s15 }
  0xec   :  { %v367_v56 = vmax.f32 %v351_v47, 0.0  ;;  %s713_s16 = scalar_lea.vmem %s621_s15, 16  ;;  %s717_s1 = scalar_lea.vmem %s621_s15, 32 }
  0xed   :  { %v368_v33 = vmax.f32 %v352_v32, 0.0  ;;  %p714_p0 = scmp.ne.s32.totalorder %s621_s15, %s713_s16  ;;  %p718_p1 = scmp.lt.s32.totalorder %s621_s15, %s621_s15 }
  0xee   :  { %v55_v35 = vpop.permute.xlu1 %54  ;;  %p719_p2 = scmp.lt.s32.totalorder %s717_s1, %s713_s16 }
  0xef   :  { %v390_v36 = vpack.c.bf16 %v369_v34, %v368_v33  ;;  %v136_v51 = vmul.f32 %v962_v2, %v55_v35  ;;  %v407_v34 = vpop.permute.xlu0 %406 }
  0xf0   :  { %p720_p3 = por %p719_p2, %p718_p1 }
  0xf1   :  { %660 = vmatprep.subr.bf16.mxu0 %v390_v36  ;;  %v236_v61 = vadd.f32 %v220_v52, %v136_v51 }
  0xf2   :  { %v60_v37 = vpop.permute.xlu1 %59  ;;  %661 = vmatpush3.bf16.msra.mxu0 %v390_v36  ;;  %p721_p4 = pnand %p720_p3, %p714_p0 }
  0xf3   :  { %v137_v59 = vmul.f32 %v962_v2, %v60_v37  ;;  %v712_v2 = vld [vmem:[%s1023_s3 + $0x18] sm:$0xff]  }
  0xf7   :  { %v158_v49 = vpop.permute.xlu1 %157 }
  0xf8   :  { %v221_v54 = vmul.f32 %v960_v1, %v158_v49  ;;  %v711_v1 = vld [vmem:[%s1023_s3 + $0x10] sm:$0xff]   ;;  %v550_v49 = vpop.permute.xlu0 %549 }
  0xfa   :  { %v237_v62 = vadd.f32 %v221_v54, %v137_v59 }
  0xfc   :  { %v281_v50 = vpop.permute.xlu1 %280 }
  0xfd   :  { %v350_v40 = vadd.f32 %v281_v50, %v238_v48 }
  0xff   :  { %v366_v55 = vmax.f32 %v350_v40, 0.0 }
 0x100   :  { %v271_v58 = vpop.permute.xlu1 %270 }
 0x101   :  { %v389_v60 = vpack.c.bf16 %v367_v56, %v366_v55  ;;  %v348_v53 = vadd.f32 %v271_v58, %v236_v61 }
 0x103   :  { %662 = vmatprep.subr.bf16.mxu0 %v389_v60  ;;  %v364_v3 = vmax.f32 %v348_v53, 0.0 }
 0x104   :  { %v276_v63 = vpop.permute.xlu1 %275  ;;  %663 = vmatpush3.bf16.msra.mxu0 %v389_v60  ;;  %v611_v60 = vstv %s1028_s8 }
 0x105   :  { %v349_v0 = vadd.f32 %v276_v63, %v237_v62 }
 0x107   :  { %v365_v4 = vmax.f32 %v349_v0, 0.0 }
 0x108   :  { %v442_v8 = vpop.permute.xlu1 %441 }
 0x109   :  { %v388_v5 = vpack.c.bf16 %v365_v4, %v364_v3 }
 0x10b   :  { %664 = vmatprep.subr.bf16.mxu0 %v388_v5 }
 0x10c   :  { %665 = vmatpush3.bf16.msra.mxu0 %v388_v5  ;;  %v432_v12 = vpop.permute.xlu1 %431 }
 0x10f   :  { %667 = vmatmul.mubr.bf16.vlgmr.msra.gmra.mxu0 %v710_v57 }
 0x110   :  { %670 = vmatprep.mubr.bf16.mxu0 %v711_v1  ;;  %v422_v19 = vpop.permute.xlu1 %421 }
 0x114   :  { %v412_v30 = vpop.permute.xlu1 %411 }
 0x117   :  { %671 = vmatmul.mubr.bf16.gmra.mxu0 %v712_v2 }
 0x118   :  { %v601_v50 = vpop.permute.xlu1 %600 }
 0x1cf   :  { %v668_v7 = vpop.f32.mrf.mxu0 }
 0x1d0   :  { %v511_v28 = vadd.f32 %v668_v7, %v417_v24 }
 0x1d1   :  { %v502_v42 = vpop.f32.mrf.mxu0 }
 0x1d2   :  { %v535_v35 = vmax.f32 %v511_v28, 0.0  ;;  %v503_v36 = vadd.f32 %v502_v42, %v407_v34 }
 0x1d3   :  { %v669_v10 = vpop.f32.mrf.mxu0 }
 0x1d4   :  { %v514_v25 = vadd.f32 %v669_v10, %v422_v19  ;;  %v533_v39 = vmax.f32 %v503_v36, 0.0 }
 0x1d5   :  { %v505_v11 = vpop.f32.mrf.mxu0 }
 0x1d6   :  { %v536_v31 = vmax.f32 %v514_v25, 0.0  ;;  %v506_v32 = vadd.f32 %v505_v11, %v412_v30 }
 0x1d7   :  { %v672_v13 = vpop.f32.mrf.mxu0 }
 0x1d8   :  { %v527_v16 = vadd.f32 %v672_v13, %v437_v9  ;;  %v543_v37 = vpack.c.bf16 %v536_v31, %v535_v35  ;;  %v534_v38 = vmax.f32 %v506_v32, 0.0 }
 0x1d9   :  { %v518_v15 = vpop.f32.mrf.mxu0 }
 0x1da   :  { %v539_v21 = vmax.f32 %v527_v16, 0.0  ;;  %v519_v22 = vadd.f32 %v518_v15, %v427_v14  ;;  %v542_v41 = vpack.c.bf16 %v534_v38, %v533_v39 }
 0x1db   :  { %v673_v17 = vpop.f32.mrf.mxu0 }
 0x1dc   :  { %v530_v18 = vadd.f32 %v673_v17, %v442_v8  ;;  %v537_v29 = vmax.f32 %v519_v22, 0.0 }
 0x1dd   :  { %v521_v20 = vpop.f32.mrf.mxu0 }
 0x1de   :  { %v540_v23 = vmax.f32 %v530_v18, 0.0  ;;  %v522_v45 = vadd.f32 %v521_v20, %v432_v12 }
 0x1e0   :  { %v538_v26 = vmax.f32 %v522_v45, 0.0  ;;  %v545_v27 = vpack.c.bf16 %v540_v23, %v539_v21 }
 0x1e2   :  { %675 = vmatpush3.bf16.msra.mxu1 %v545_v27  ;;  %v544_v33 = vpack.c.bf16 %v538_v26, %v537_v29 }
 0x1e3   :  { %676 = vmatprep.subr.bf16.mxu1 %v737_v6 }
 0x1e6   :  { %677 = vmatpush3.bf16.msra.mxu1 %v544_v33 }
 0x1e7   :  { %678 = vmatprep.subr.bf16.mxu1 %v737_v6 }
 0x1ea   :  { %679 = vmatpush3.bf16.msra.mxu1 %v543_v37 }
 0x1eb   :  { %680 = vmatprep.subr.bf16.mxu1 %v737_v6 }
 0x1ee   :  { %681 = vmatpush3.bf16.msra.mxu1 %v542_v41 }
 0x1f1   :  { %683 = vmatmul.mubr.msk.bf16.vlgmr.msra.gmra.mxu1 %vm552_vm1, %v541_v43 }
 0x2b1   :  { %v590_v44 = vpop.f32.mrf.mxu1 }
 0x2b2   :  { %v591_v46 = vadd.f32 %v590_v44, %v550_v49 }
 0x2b3   :  { %v684_v47 = vpop.f32.mrf.mxu1 }
 0x2b4   :  { %v596_v48 = vmax.f32 %v591_v46, 0.0 }
 0x2b5   :  { %v593_v51 = vpop.f32.mrf.mxu1 }
 0x2b6   :  { %v603_v40 = vmul.f32 %v601_v50, %v596_v48 }
 0x2b7   :  { %v685_v52 = vpop.f32.mrf.mxu1 }
 0x2b8   :  { %v604_v54 = vrot.slane %v603_v40, 4 }
 0x2ba   :  { %v605_v55 = vadd.f32 %v604_v54, %v603_v40 }
 0x2bc   :  { %v606_v56 = vrot.slane %v605_v55, 2 }
 0x2be   :  { %v607_v58 = vadd.f32 %v606_v56, %v605_v55 }
 0x2c0   :  { %v608_v59 = vrot.slane %v607_v58, 1 }
 0x2c2   :  { %v609_v61 = vadd.f32 %v608_v59, %v607_v58 }
 0x2c4   :  { %v612_v53 = vadd.f32 %v611_v60, %v609_v61 }
 0x2c6   :  { %613 = vst [vmem:[#allocation3] sm:$0x1] %v612_v53 }
 0x2c7   :  { %724 = shalt.err (!%p721_p4)
}
 0x2c8   :  { %623 = dma.vmem_to_hbm [thread:$0]  %s621_s15, 16, %s1029_s9, [#allocation4]  }
 0x2c9   :  { %733 = dma.done.wait [#allocation4], 16  }
 0x2ca   :  { %734 = vsyncadd [#allocation4], 4294967280 }
 0x2cb   :  { %627 = vsyncpa [#allocation4], 1 }

</bundles_post_ra>
